<compile_context>
chip_gen: v7x
topology: tpu7x:2x2x1
jax: 0.10.0
libtpu: 0.0.40
codegen_flags: <defaults>
</compile_context>

<pallas_src>
import jax
import jax.numpy as jnp
from jax import lax
from jax.experimental import pallas as pl
from jax.experimental.pallas import tpu as pltpu

KH = KW = 3


def _round_up(n, m):
    return -(-n // m) * m


def build_row_collapsed_weights(weight, bias, c_pad):
    """(C, C, 3, 3) OIHW conv weight + (C,) bias -> (2*Cp, 10*C) fused LHS.

    Row block s in {0,1} is the output-row parity.  Column layout:
      columns [t*C, (t+1)*C) for tap t = i*3 + kw  (i = padded-row shift 0..2,
      kw = kernel column 0..2), plus a bias block in columns [9*C, 10*C)
      (bias lives in column 9*C, the rest are zero; the matching slab rows are
      all ones, so the bias is added by the matmul itself).
    Row-collapse rule: conv output row 2a+s reads upsampled row 2a+s-1+kh, i.e.
    padded original row a + i with i = (s + kh + 1) // 2.
    """
    C = weight.shape[0]
    w = weight.astype(jnp.float32)
    b = bias.astype(jnp.float32)
    blocks = []
    for s in (0, 1):
        taps = [jnp.zeros((C, C), jnp.float32) for _ in range(9)]
        for kh in range(KH):
            i = (s + kh + 1) // 2
            for kw in range(KW):
                taps[i * 3 + kw] = taps[i * 3 + kw] + w[:, :, kh, kw]
        bias_blk = jnp.zeros((C, C), jnp.float32).at[:, 0].set(b)
        w_s = jnp.concatenate(taps + [bias_blk], axis=1)       # (C, 10*C)
        w_s = jnp.pad(w_s, ((0, c_pad - C), (0, 0)))           # (Cp, 10*C)
        blocks.append(w_s)
    return jnp.concatenate(blocks, axis=0)                     # (2*Cp, 10*C)


def nearest_upsample_2x(x):
    B, C, H, W = x.shape
    xu = jnp.broadcast_to(x[:, :, :, None, :, None], (B, C, H, 2, W, 2))
    return xu.reshape(B, C, 2 * H, 2 * W)


@jax.jit
def upsample_forward(x, weight, bias):
    """Equivalent of Upsample.forward: nearest 2x upsample -> 3x3 same conv."""
    B, C, H, W = x.shape
    Wu = 2 * W                        # W-upsampled row width
    Wp = Wu + 2                       # padded row stride in the flattened layout
    N = H * Wp                        # valid lanes per row-parity plane
    Np = _round_up(N, 128)            # lane-dense output width (review item 4)
    Cp = max(8, _round_up(C, 8))      # channel rows padded for sublane-dense store
    K = 10 * C                        # 9 tap blocks + ones/bias block
    d_max = 2 * Wp + (KW - 1)         # largest static lane shift used by a tap
    L = _round_up(d_max + Np, 128)    # flattened input length incl. slice headroom

    # Input prep (wrapper, fused by XLA into one pass over the small input):
    # nearest-upsample along W only, cast to bf16, zero-pad 1 row top/bottom and
    # 1 col left/right (the conv's 'same' padding after the row-parity collapse),
    # flatten spatially and zero-extend lanes so every tap slice stays in bounds.
    xw = jnp.broadcast_to(x[..., None], (B, C, H, W, 2)).reshape(B, C, H, Wu)
    xw = xw.astype(jnp.bfloat16)
    xp = jnp.pad(xw, ((0, 0), (0, 0), (1, 1), (1, 1)))          # (B, C, H+2, Wp)
    xf = xp.reshape(B, C, (H + 2) * Wp)
    xf = jnp.pad(xf, ((0, 0), (0, 0), (0, L - (H + 2) * Wp)))   # (B, C, L)

    w_lhs = build_row_collapsed_weights(weight, bias, Cp).astype(jnp.bfloat16)

    def kernel(x_ref, w_ref, o_ref, slab_ref):
        # x_ref:    (C, L)      bf16  W-upsampled, padded, flattened input (1 image)
        # w_ref:    (2*Cp, K)   bf16  row-parity-collapsed weights + bias block
        # o_ref:    (2*Cp, Np)  f32   both row-parity planes, channel-padded, dense
        # slab_ref: (K, Np)     bf16  9-offset im2col slab + ones block (scratch)
        for i in range(3):
            for kw in range(3):
                d = i * Wp + kw                               # static lane shift
                slab_ref[pl.ds((i * 3 + kw) * C, C), :] = x_ref[:, d:d + Np]
        slab_ref[pl.ds(9 * C, C), :] = jnp.ones((C, Np), slab_ref.dtype)
        # One fused MXU matmul: all taps, both row parities, bias folded in.
        # Single unsliced sublane/lane-dense store (no [:C] slice in-kernel).
        o_ref[...] = jnp.dot(w_ref[...], slab_ref[...],
                             preferred_element_type=jnp.float32)

    planar = pl.pallas_call(
        kernel,
        out_shape=jax.ShapeDtypeStruct((B, 2 * Cp, Np), jnp.float32),
        grid=(B,),
        in_specs=[
            pl.BlockSpec((None, C, L), lambda b: (b, 0, 0)),
            pl.BlockSpec((2 * Cp, K), lambda b: (0, 0)),
        ],
        out_specs=pl.BlockSpec((None, 2 * Cp, Np), lambda b: (b, 0, 0)),
        scratch_shapes=[pltpu.VMEM((K, Np), jnp.bfloat16)],
        compiler_params=pltpu.CompilerParams(
            dimension_semantics=("parallel",)),
    )(xf, w_lhs)

    # De-pad (channels, lane padding, the 2 pad columns per row) and interleave
    # the two row-parity planes.  Columns are already interleaved by construction,
    # so this only moves contiguous 2W-wide rows — cheap layout plumbing.
    y = planar[:, :, :N].reshape(B, 2, Cp, H, Wp)[:, :, :C, :, :Wu]
    y = y.transpose(0, 2, 3, 1, 4).reshape(B, C, 2 * H, 2 * W)
    return y.astype(x.dtype)


if __name__ == "__main__":
    key = jax.random.PRNGKey(0)
    kx, kw, kb = jax.random.split(key, 3)

    B, C, H, W = 2, 4, 16, 16
    x = jax.random.normal(kx, (B, C, H, W), jnp.float32)

    # deterministic parameter init (PyTorch Conv2d-style uniform bounds)
    fan_in = C * KH * KW
    bound = 1.0 / (fan_in ** 0.5)
    weight = jax.random.uniform(kw, (C, C, KH, KW), jnp.float32, -bound, bound)
    bias = jax.random.uniform(kb, (C,), jnp.float32, -bound, bound)

    out = jax.block_until_ready(upsample_forward(x, weight, bias))

    # pure-JAX reference for correctness
    xu = nearest_upsample_2x(x)
    ref = lax.conv_general_dilated(
        xu, weight, window_strides=(1, 1), padding=((1, 1), (1, 1)),
        dimension_numbers=("NCHW", "OIHW", "NCHW"))
    ref = ref + bias[None, :, None, None]

    assert out.shape == (B, C, 2 * H, 2 * W), out.shape
    # bf16 inputs/weights with f32 accumulation -> loosened tolerance.
    err = float(jnp.max(jnp.abs(out - ref)))
    assert jnp.allclose(out, ref, atol=3e-2, rtol=3e-2), err
    print("KERNEL_OK")
</pallas_src>

<mosaic_0001>
module attributes {stable_mosaic.version = 11 : i64} {
  func.func @kernel(%arg0: i32, %arg1: memref<1x4x768xbf16, #tpu.memory_space<vmem>>, %arg2: memref<16x40xbf16, #tpu.memory_space<vmem>>, %arg3: memref<1x16x640xf32, #tpu.memory_space<vmem>>, %arg4: memref<40x640xbf16, #tpu.memory_space<vmem>>) attributes {dimension_semantics = [#tpu.dimension_semantics<parallel>], iteration_bounds = array<i64: 2>, scalar_prefetch = 0 : i64, scratch_operands = 1 : i64, tpu.core_type = #tpu.core_type<tc>, window_params = [{transform_indices = @transform_0, window_bounds = array<i64: 1, 4, 768>}, {pipeline_mode = #tpu.pipeline_mode<synchronous>, transform_indices = @transform_1, window_bounds = array<i64: 16, 40>}, {transform_indices = @transform_2, window_bounds = array<i64: 1, 16, 640>}]} {
    %c0 = arith.constant 0 : index
    %c0_0 = arith.constant 0 : index
    %c0_1 = arith.constant 0 : index
    %0 = vector.load %arg1[%c0, %c0_0, %c0_1] : memref<1x4x768xbf16, #tpu.memory_space<vmem>>, vector<1x4x640xbf16>
    %1 = vector.shape_cast %0 : vector<1x4x640xbf16> to vector<4x640xbf16>
    %c0_2 = arith.constant 0 : index
    %c0_3 = arith.constant 0 : index
    %2 = vector.load %arg4[%c0_2, %c0_3] : memref<40x640xbf16, #tpu.memory_space<vmem>>, vector<4x640xbf16>
    tpu.vector_store %arg4[%c0_2, %c0_3], %1 {strides = array<i32>} : memref<40x640xbf16, #tpu.memory_space<vmem>>, vector<4x640xbf16>,
    %c0_4 = arith.constant 0 : index
    %c0_5 = arith.constant 0 : index
    %c1 = arith.constant 1 : index
    %3 = vector.load %arg1[%c0_4, %c0_5, %c1] : memref<1x4x768xbf16, #tpu.memory_space<vmem>>, vector<1x4x640xbf16>
    %4 = vector.shape_cast %3 : vector<1x4x640xbf16> to vector<4x640xbf16>
    %c4 = arith.constant 4 : index
    %c0_6 = arith.constant 0 : index
    %5 = vector.load %arg4[%c4, %c0_6] : memref<40x640xbf16, #tpu.memory_space<vmem>>, vector<4x640xbf16>
    tpu.vector_store %arg4[%c4, %c0_6], %4 {strides = array<i32>} : memref<40x640xbf16, #tpu.memory_space<vmem>>, vector<4x640xbf16>,
    %c0_7 = arith.constant 0 : index
    %c0_8 = arith.constant 0 : index
    %c2 = arith.constant 2 : index
    %6 = vector.load %arg1[%c0_7, %c0_8, %c2] : memref<1x4x768xbf16, #tpu.memory_space<vmem>>, vector<1x4x640xbf16>
    %7 = vector.shape_cast %6 : vector<1x4x640xbf16> to vector<4x640xbf16>
    %c8 = arith.constant 8 : index
    %c0_9 = arith.constant 0 : index
    %8 = vector.load %arg4[%c8, %c0_9] : memref<40x640xbf16, #tpu.memory_space<vmem>>, vector<4x640xbf16>
    tpu.vector_store %arg4[%c8, %c0_9], %7 {strides = array<i32>} : memref<40x640xbf16, #tpu.memory_space<vmem>>, vector<4x640xbf16>,
    %c0_10 = arith.constant 0 : index
    %c0_11 = arith.constant 0 : index
    %c34 = arith.constant 34 : index
    %9 = vector.load %arg1[%c0_10, %c0_11, %c34] : memref<1x4x768xbf16, #tpu.memory_space<vmem>>, vector<1x4x640xbf16>
    %10 = vector.shape_cast %9 : vector<1x4x640xbf16> to vector<4x640xbf16>
    %c12 = arith.constant 12 : index
    %c0_12 = arith.constant 0 : index
    %11 = vector.load %arg4[%c12, %c0_12] : memref<40x640xbf16, #tpu.memory_space<vmem>>, vector<4x640xbf16>
    tpu.vector_store %arg4[%c12, %c0_12], %10 {strides = array<i32>} : memref<40x640xbf16, #tpu.memory_space<vmem>>, vector<4x640xbf16>,
    %c0_13 = arith.constant 0 : index
    %c0_14 = arith.constant 0 : index
    %c35 = arith.constant 35 : index
    %12 = vector.load %arg1[%c0_13, %c0_14, %c35] : memref<1x4x768xbf16, #tpu.memory_space<vmem>>, vector<1x4x640xbf16>
    %13 = vector.shape_cast %12 : vector<1x4x640xbf16> to vector<4x640xbf16>
    %c16 = arith.constant 16 : index
    %c0_15 = arith.constant 0 : index
    %14 = vector.load %arg4[%c16, %c0_15] : memref<40x640xbf16, #tpu.memory_space<vmem>>, vector<4x640xbf16>
    tpu.vector_store %arg4[%c16, %c0_15], %13 {strides = array<i32>} : memref<40x640xbf16, #tpu.memory_space<vmem>>, vector<4x640xbf16>,
    %c0_16 = arith.constant 0 : index
    %c0_17 = arith.constant 0 : index
    %c36 = arith.constant 36 : index
    %15 = vector.load %arg1[%c0_16, %c0_17, %c36] : memref<1x4x768xbf16, #tpu.memory_space<vmem>>, vector<1x4x640xbf16>
    %16 = vector.shape_cast %15 : vector<1x4x640xbf16> to vector<4x640xbf16>
    %c20 = arith.constant 20 : index
    %c0_18 = arith.constant 0 : index
    %17 = vector.load %arg4[%c20, %c0_18] : memref<40x640xbf16, #tpu.memory_space<vmem>>, vector<4x640xbf16>
    tpu.vector_store %arg4[%c20, %c0_18], %16 {strides = array<i32>} : memref<40x640xbf16, #tpu.memory_space<vmem>>, vector<4x640xbf16>,
    %c0_19 = arith.constant 0 : index
    %c0_20 = arith.constant 0 : index
    %c68 = arith.constant 68 : index
    %18 = vector.load %arg1[%c0_19, %c0_20, %c68] : memref<1x4x768xbf16, #tpu.memory_space<vmem>>, vector<1x4x640xbf16>
    %19 = vector.shape_cast %18 : vector<1x4x640xbf16> to vector<4x640xbf16>
    %c24 = arith.constant 24 : index
    %c0_21 = arith.constant 0 : index
    %20 = vector.load %arg4[%c24, %c0_21] : memref<40x640xbf16, #tpu.memory_space<vmem>>, vector<4x640xbf16>
    tpu.vector_store %arg4[%c24, %c0_21], %19 {strides = array<i32>} : memref<40x640xbf16, #tpu.memory_space<vmem>>, vector<4x640xbf16>,
    %c0_22 = arith.constant 0 : index
    %c0_23 = arith.constant 0 : index
    %c69 = arith.constant 69 : index
    %21 = vector.load %arg1[%c0_22, %c0_23, %c69] : memref<1x4x768xbf16, #tpu.memory_space<vmem>>, vector<1x4x640xbf16>
    %22 = vector.shape_cast %21 : vector<1x4x640xbf16> to vector<4x640xbf16>
    %c28 = arith.constant 28 : index
    %c0_24 = arith.constant 0 : index
    %23 = vector.load %arg4[%c28, %c0_24] : memref<40x640xbf16, #tpu.memory_space<vmem>>, vector<4x640xbf16>
    tpu.vector_store %arg4[%c28, %c0_24], %22 {strides = array<i32>} : memref<40x640xbf16, #tpu.memory_space<vmem>>, vector<4x640xbf16>,
    %c0_25 = arith.constant 0 : index
    %c0_26 = arith.constant 0 : index
    %c70 = arith.constant 70 : index
    %24 = vector.load %arg1[%c0_25, %c0_26, %c70] : memref<1x4x768xbf16, #tpu.memory_space<vmem>>, vector<1x4x640xbf16>
    %25 = vector.shape_cast %24 : vector<1x4x640xbf16> to vector<4x640xbf16>
    %c32 = arith.constant 32 : index
    %c0_27 = arith.constant 0 : index
    %26 = vector.load %arg4[%c32, %c0_27] : memref<40x640xbf16, #tpu.memory_space<vmem>>, vector<4x640xbf16>
    tpu.vector_store %arg4[%c32, %c0_27], %25 {strides = array<i32>} : memref<40x640xbf16, #tpu.memory_space<vmem>>, vector<4x640xbf16>,
    %cst = arith.constant 1.000000e+00 : bf16
    %27 = vector.broadcast %cst : bf16 to vector<4x640xbf16>
    %c36_28 = arith.constant 36 : index
    %c0_29 = arith.constant 0 : index
    %28 = vector.load %arg4[%c36_28, %c0_29] : memref<40x640xbf16, #tpu.memory_space<vmem>>, vector<4x640xbf16>
    tpu.vector_store %arg4[%c36_28, %c0_29], %27 {strides = array<i32>} : memref<40x640xbf16, #tpu.memory_space<vmem>>, vector<4x640xbf16>,
    %c0_30 = arith.constant 0 : index
    %c0_31 = arith.constant 0 : index
    %29 = vector.load %arg2[%c0_30, %c0_31] : memref<16x40xbf16, #tpu.memory_space<vmem>>, vector<16x40xbf16>
    %c0_32 = arith.constant 0 : index
    %c0_33 = arith.constant 0 : index
    %30 = vector.load %arg4[%c0_32, %c0_33] : memref<40x640xbf16, #tpu.memory_space<vmem>>, vector<40x640xbf16>
    %cst_34 = arith.constant dense<0.000000e+00> : vector<16x640xf32>
    %31 = tpu.matmul %29, %30, %cst_34 {dimension_numbers = #tpu.dot_dimension_numbers<[1], [0], [0], [1], [0, 0, 1, 1], [], []>} : vector<16x40xbf16>, vector<40x640xbf16>, vector<16x640xf32> -> vector<16x640xf32>
    %c0_35 = arith.constant 0 : index
    %c0_36 = arith.constant 0 : index
    %c0_37 = arith.constant 0 : index
    %32 = vector.load %arg3[%c0_35, %c0_36, %c0_37] : memref<1x16x640xf32, #tpu.memory_space<vmem>>, vector<1x16x640xf32>
    %33 = vector.shape_cast %32 : vector<1x16x640xf32> to vector<16x640xf32>
    %34 = vector.shape_cast %31 : vector<16x640xf32> to vector<1x16x640xf32>
    tpu.vector_store %arg3[%c0_35, %c0_36, %c0_37], %34 {strides = array<i32>} : memref<1x16x640xf32, #tpu.memory_space<vmem>>, vector<1x16x640xf32>,
    return
  }
  func.func @transform_0(%arg0: i32) -> (i32, i32, i32) {
    %c0_i32 = arith.constant 0 : i32
    %c0_i32_0 = arith.constant 0 : i32
    %c0_i32_1 = arith.constant 0 : i32
    return %arg0, %c0_i32, %c0_i32_0 : i32, i32, i32
  }
  func.func @transform_1(%arg0: i32) -> (i32, i32) {
    %c0_i32 = arith.constant 0 : i32
    %c0_i32_0 = arith.constant 0 : i32
    %c0_i32_1 = arith.constant 0 : i32
    return %c0_i32, %c0_i32_0 : i32, i32
  }
  func.func @transform_2(%arg0: i32) -> (i32, i32, i32) {
    %c0_i32 = arith.constant 0 : i32
    %c0_i32_0 = arith.constant 0 : i32
    %c0_i32_1 = arith.constant 0 : i32
    return %arg0, %c0_i32, %c0_i32_0 : i32, i32, i32
  }
}

</mosaic_0001>

<bundles_post_ra>
// kernel: upsample_forward.1
= control target key start
LH: loop header
LB: loop body
LE: loop exit
PB: predicated region body
PF: predicated region fallthrough
CT: control target
= control target key end

     0   :  { %s996_s9 = smov 0   ;;  %s1156_s0 = inlined_call_operand.vmem [shape: bf16[2,4,768], index: 0, kind: input, shape index: {}]   ;;  %s1157_s1 = inlined_call_operand.vmem [shape: bf16[16,40], index: 1, kind: input, shape index: {}]   ;;  %s1158_s2 = inlined_call_operand.vmem [shape: f32[2,16,640], index: 2, kind: output, shape index: {}]  }
   0x1 LB: > { %s861_s10 = sadd.s32 4294967295, %s966_s9   ;;  %p865_p0 = scmp.ge.s32.totalorder %s966_s9, 1  ;;  %s966_s9 = sphi %s996_s9, %s12_s9  }
   0x2   : > { %p112_p1 = scmp.lt.s32.totalorder %s966_s9, 3 }
   0x4   : > { %p113_p2 = pnand %p865_p0, %p112_p1 }
   0x5   : > { %p134_p3 = scmp.lt.s32.totalorder (!%p113_p2), %s861_s10, 1  ;;  %v186_v0 = vlaneseq (!%p113_p2)  ;;  %v968_v1 = vmov (!%p113_p2), 1983009808   ;;  %s969_s15 = smov (!%p113_p2), 126   ;;  %v974_v12 = vmov (!%p113_p2), 1065369472  }
   0x6   : > { %116 = sbr.rel (%p113_p2) target bundleno = 416 (0x1a0), region = 28  ;;  %v184_v2 = vunpack.c.l.s4 (!%p113_p2), %v968_v1  ;;  %s970_s16 = smov (!%p113_p2), 127   ;;  %559 = vst [vmem:[#allocation2 + $0x50] sm:$0xcc] (!%p113_p2), %v974_v12  ;;  %560 = vst [vmem:[#allocation2 + $0x58] sm:$0xcc] (!%p113_p2), %v974_v12 }
   0x7   : > { %v187_v3 = vshrl.u32 (!%p113_p2), %v186_v0, 7  ;;  %s971_s17 = smov (!%p113_p2), 94   ;;  %s972_s18 = smov (!%p113_p2), 93   ;;  %v978_v20 = vmov (!%p113_p2), 0   ;;  %vm214_vm0 = vcmask (!%p113_p2), 1043456   ;;  %vm263_vm1 = vcmask (!%p113_p2), 1031168  }
   0x8   : > { %v185_v4 = vunpack.c.0.s8 (!%p113_p2), %v184_v2  ;;  %s973_s19 = smov (!%p113_p2), 92   ;;  %s975_s20 = smov (!%p113_p2), 60   ;;  %701 = vmatprep.mubr.bf16.mxu0 (!%p113_p2), %v978_v20  ;;  %744 = vmatprep.mubr.bf16.mxu1 (!%p113_p2), %v978_v20  ;;  %vm216_vm2 = vcmask (!%p113_p2), 1039360   ;;  %vm311_vm3 = vcmask (!%p113_p2), 769024   ;;  %vm358_vm4 = vcmask (!%p113_p2), 760832  }
   0x9   : > { %s976_s21 = smov (!%p113_p2), 59   ;;  %s977_s22 = smov (!%p113_p2), 58   ;;  %vm406_vm5 = vcmask (!%p113_p2), 752640   ;;  %vm453_vm6 = vcmask (!%p113_p2), 490496   ;;  %vm501_vm7 = vcmask (!%p113_p2), 482304   ;;  %vm548_vm8 = vcmask (!%p113_p2), 474112  }
   0xa   : > { %v188_v5 = vsub.s32 (!%p113_p2), %v185_v4, %v187_v3  ;;  %vm649_vm9 = vcmask (!%p113_p2), 326656   ;;  %vm980_vm10 = vmmov (!%p113_p2), 0  }
   0xd   : > { %s1160_s10 = smov (!%p134_p3, %s861_s10), 1 }
   0xe   : > { %s912_s11 = smul.u32 12, %s1160_s10 }
   0xf   : > { %s913_s25 = smul.u32 80, %s1160_s10 }
  0x10   : > { %s1010_s14 = scalar_lea.vmem %s1156_s0, %s912_s11 }
  0x11   : > { %v227_v6 = vld [vmem:[%s1010_s14] sm:$0xff]  ;;  %v868_v13 = vld.sshfl [vmem:[%s1010_s14 + $0x8] sm:$0x3 pattern:$0x76325410]  ;;  %s143_s28 = scalar_lea.vmem %s1158_s2, %s913_s25 }
  0x12   : > { %v238_v7 = vrot.slane %v227_v6, %v188_v5  ;;  %v231_v8 = vcombine.high %v227_v6, %v227_v6  ;;  %869 = vst.sshfl [vmem:[#allocation2] sm:$0xf pattern:$0x76325410] %v227_v6  ;;  %v182_v9 = vcombine.low %v227_v6, %v227_v6  ;;  %177 = vst [vmem:[#allocation2 + $0x10] sm:$0x3] %v868_v13 }
  0x13   : > { %v937_v14 = vld [vmem:[%s1010_s14 + $0x8] ss:$0 sps:$4 sm:$0xff]  }
  0x14   : > { %253 = vrot.lane.b32.xlu1 %v238_v7, %s969_s15  ;;  %207 = vrot.lane.b32.xlu0 %v238_v7, %s970_s16  ;;  %870 = vst.sshfl [vmem:[#allocation2 + $0x8] sm:$0xf pattern:$0x76325410] %v231_v8  ;;  %v245_v10 = vrot.slane %v231_v8, %v188_v5  ;;  %v189_v11 = vrot.slane %v182_v9, %v188_v5  ;;  %v938_v16 = vld [vmem:[%s1010_s14 + $0x8] ss:$0 sps:$4 sm:$0xff]  }
  0x15   : > { %v204_v15 = vrot.slane %v937_v14, %v188_v5  ;;  %v871_v17 = vld.sshfl [vmem:[%s1010_s14 + $0x8] sm:$0x33 pattern:$0x76325410]  ;;  %v300_v18 = vrot.slane %v938_v16, %v188_v5 }
  0x16   : > { %v939_v19 = vld [vmem:[%s1010_s14 + $0x8] ss:$0 sps:$4 sm:$0xff]  }
  0x17   : > { %v395_v21 = vrot.slane %v939_v19, %v188_v5  ;;  %v940_v22 = vld [vmem:[%s1010_s14 + $0x8] ss:$0 sps:$4 sm:$0xff]  }
  0x18   : > { %303 = vrot.lane.b32.xlu1 %v238_v7, %s971_s17  ;;  %348 = vrot.lane.b32.xlu0 %v238_v7, %s972_s18  ;;  %v490_v23 = vrot.slane %v940_v22, %v188_v5 }
  0x1c   : > { %255 = vrot.lane.b32.xlu1 %v245_v10, %s969_s15  ;;  %205 = vrot.lane.b32.xlu0 %v189_v11, %s970_s16 }
  0x20   : > { %350 = vrot.lane.b32.xlu1 %v245_v10, %s972_s18  ;;  %301 = vrot.lane.b32.xlu0 %v189_v11, %s971_s17 }
  0x24   : > { %398 = vrot.lane.b32.xlu1 %v238_v7, %s973_s19  ;;  %396 = vrot.lane.b32.xlu0 %v189_v11, %s973_s19 }
  0x28   : > { %445 = vrot.lane.b32.xlu1 %v245_v10, %s975_s20  ;;  %443 = vrot.lane.b32.xlu0 %v238_v7, %s975_s20 }
  0x2c   : > { %493 = vrot.lane.b32.xlu1 %v238_v7, %s976_s21  ;;  %491 = vrot.lane.b32.xlu0 %v189_v11, %s976_s21 }
  0x30   : > { %540 = vrot.lane.b32.xlu1 %v245_v10, %s977_s22  ;;  %538 = vrot.lane.b32.xlu0 %v238_v7, %s977_s22 }
  0x34   : > { %257 = vrot.lane.b32.xlu1 %v871_v17, %s969_s15  ;;  %209 = vrot.lane.b32.xlu0 %v204_v15, %s970_s16 }
  0x38   : > { %352 = vrot.lane.b32.xlu1 %v871_v17, %s972_s18  ;;  %305 = vrot.lane.b32.xlu0 %v300_v18, %s971_s17 }
  0x3c   : > { %447 = vrot.lane.b32.xlu1 %v871_v17, %s975_s20  ;;  %400 = vrot.lane.b32.xlu0 %v395_v21, %s973_s19 }
  0x40   : > { %542 = vrot.lane.b32.xlu1 %v871_v17, %s977_s22  ;;  %495 = vrot.lane.b32.xlu0 %v490_v23, %s976_s21 }
  0x86   : > { %v254_v24 = vpop.permute.xlu1 %253  ;;  %v1034_v25 = vpop.permute.xlu0 %207 }
  0x87   : > { %v259_v30 = vrot.slane %v254_v24, 4  ;;  %v212_v31 = vrot.slane %v1034_v25, 4 }
  0x8a   : > { %v1036_v26 = vpop.permute.xlu1 %303  ;;  %v349_v27 = vpop.permute.xlu0 %348 }
  0x8b   : > { %v308_v40 = vrot.slane %v1036_v26, 4  ;;  %v354_v41 = vrot.slane %v349_v27, 4 }
  0x8e   : > { %v1038_v28 = vpop.permute.xlu1 %255  ;;  %v206_v29 = vpop.permute.xlu0 %205 }
  0x8f   : > { %v260_v32 = vrot.slane %v1038_v28, 4  ;;  %v211_v33 = vrot.slane %v206_v29, 4 }
  0x91   : > { %v262_v34 = vsel %vm214_vm0, %v259_v30, %v260_v32  ;;  %v215_v35 = vsel %vm214_vm0, %v211_v33, %v212_v31 }
  0x92   : > { %v264_v36 = vsel %vm263_vm1, %v254_v24, %v262_v34  ;;  %v217_v37 = vsel %vm216_vm2, %v206_v29, %v215_v35  ;;  %v1050_v38 = vpop.permute.xlu1 %350  ;;  %v302_v39 = vpop.permute.xlu0 %301 }
  0x93   : > { %271 = vst [vmem:[#allocation2 + $0x14] sm:$0x33] %v264_v36  ;;  %224 = vst [vmem:[#allocation2] sm:$0xcc] %v217_v37  ;;  %v355_v42 = vrot.slane %v1050_v38, 4  ;;  %v307_v43 = vrot.slane %v302_v39, 4 }
  0x95   : > { %v357_v44 = vsel %vm214_vm0, %v354_v41, %v355_v42  ;;  %v310_v45 = vsel %vm214_vm0, %v307_v43, %v308_v40 }
  0x96   : > { %v312_v46 = vsel %vm311_vm3, %v302_v39, %v310_v45  ;;  %v1061_v47 = vpop.permute.xlu1 %398  ;;  %v397_v48 = vpop.permute.xlu0 %396  ;;  %v359_v49 = vsel %vm358_vm4, %v349_v27, %v357_v44 }
  0x97   : > { %319 = vst [vmem:[#allocation2 + $0x14] sm:$0xcc] %v312_v46  ;;  %v403_v50 = vrot.slane %v1061_v47, 4  ;;  %v402_v51 = vrot.slane %v397_v48, 4  ;;  %366 = vst [vmem:[#allocation2 + $0x28] sm:$0x33] %v359_v49 }
  0x99   : > { %v405_v52 = vsel %vm214_vm0, %v402_v51, %v403_v50 }
  0x9a   : > { %v407_v53 = vsel %vm406_vm5, %v397_v48, %v405_v52  ;;  %v1069_v54 = vpop.permute.xlu1 %445  ;;  %v444_v55 = vpop.permute.xlu0 %443 }
  0x9b   : > { %414 = vst [vmem:[#allocation2 + $0x28] sm:$0xcc] %v407_v53  ;;  %v450_v56 = vrot.slane %v1069_v54, 4  ;;  %v449_v57 = vrot.slane %v444_v55, 4 }
  0x9d   : > { %v452_v58 = vsel %vm214_vm0, %v449_v57, %v450_v56 }
  0x9e   : > { %v454_v59 = vsel %vm453_vm6, %v444_v55, %v452_v58  ;;  %v1076_v60 = vpop.permute.xlu1 %493  ;;  %v492_v61 = vpop.permute.xlu0 %491  ;;  %v941_v62 = vld [vmem:[#allocation2 + $0x4] ss:$20 sps:$4 sm:$0xff]   ;;  %v943_v63 = vld [vmem:[#allocation2] ss:$20 sps:$4 sm:$0xff]  }
  0x9f   : > { %461 = vst [vmem:[#allocation2 + $0x3c] sm:$0x33] %v454_v59  ;;  %v498_v0 = vrot.slane %v1076_v60, 4  ;;  %v497_v1 = vrot.slane %v492_v61, 4  ;;  %669 = vmatprep.subr.bf16.mxu0 %v941_v62 }
  0xa0   : > { %670 = vmatpush1.bf16.msra.mxu0 %v943_v63 }
  0xa1   : > { %v500_v2 = vsel %vm214_vm0, %v497_v1, %v498_v0 }
  0xa2   : > { %v502_v3 = vsel %vm501_vm7, %v492_v61, %v500_v2  ;;  %v1083_v4 = vpop.permute.xlu1 %540  ;;  %v539_v5 = vpop.permute.xlu0 %538  ;;  %v570_v22 = vld [vmem:[#allocation2 + $0x28] sm:$0xff] }
  0xa3   : > { %509 = vst [vmem:[#allocation2 + $0x3c] sm:$0xcc] %v502_v3  ;;  %v545_v6 = vrot.slane %v1083_v4, 4  ;;  %v544_v7 = vrot.slane %v539_v5, 4 }
  0xa5   : > { %v547_v8 = vsel %vm214_vm0, %v544_v7, %v545_v6 }
  0xa6   : > { %v549_v9 = vsel %vm548_vm8, %v539_v5, %v547_v8  ;;  %v258_v10 = vpop.permute.xlu1 %257  ;;  %v210_v11 = vpop.permute.xlu0 %209 }
  0xa7   : > { %556 = vst [vmem:[#allocation2 + $0x50] sm:$0x33] %v549_v9  ;;  %v261_v12 = vrot.slane %v258_v10, 4  ;;  %v213_v13 = vrot.slane %v210_v11, 4 }
  0xa9   : > { %v265_v14 = vsel %vm214_vm0, %v260_v32, %v261_v12  ;;  %v267_v15 = vsel %vm263_vm1, %v258_v10, %v261_v12  ;;  %v218_v16 = vsel %vm214_vm0, %v212_v31, %v213_v13  ;;  %v220_v17 = vsel %vm216_vm2, %v210_v11, %v213_v13 }
  0xaa   : > { %v266_v18 = vsel %vm263_vm1, %v1038_v28, %v265_v14  ;;  %273 = vst [vmem:[#allocation2 + $0x24] sm:$0x3] %v267_v15  ;;  %v219_v19 = vsel %vm216_vm2, %v1034_v25, %v218_v16  ;;  %226 = vst [vmem:[#allocation2 + $0x10] sm:$0xc] %v220_v17  ;;  %v353_v20 = vpop.permute.xlu1 %352  ;;  %v306_v21 = vpop.permute.xlu0 %305  ;;  %v573_v23 = vld [vmem:[#allocation2 + $0x3c] sm:$0xff] }
  0xab   : > { %v944_v24 = vld [vmem:[#allocation2 + $0x2c] ss:$20 sps:$4 sm:$0xff]   ;;  %272 = vst [vmem:[#allocation2 + $0x1c] sm:$0x33] %v266_v18  ;;  %225 = vst [vmem:[#allocation2 + $0x8] sm:$0xcc] %v219_v19  ;;  %v881_v30 = vcombine.low %v570_v22, %v573_v23 }
  0xac   : > { %v356_v27 = vrot.slane %v353_v20, 4  ;;  %v309_v29 = vrot.slane %v306_v21, 4  ;;  %671 = vmatprep.subr.bf16.mxu0 %v944_v24 }
  0xad   : > { %672 = vmatpush1.bf16.msra.mxu0 %v881_v30 }
  0xae   : > { %v360_v28 = vsel %vm214_vm0, %v355_v42, %v356_v27  ;;  %v362_v31 = vsel %vm358_vm4, %v353_v20, %v356_v27  ;;  %v313_v25 = vsel %vm214_vm0, %v308_v40, %v309_v29  ;;  %v315_v32 = vsel %vm311_vm3, %v306_v21, %v309_v29  ;;  %v448_v35 = vpop.permute.xlu1 %447  ;;  %v401_v36 = vpop.permute.xlu0 %400  ;;  %v576_v37 = vld [vmem:[#allocation2 + $0x50] sm:$0xff] }
  0xaf   : > { %v361_v33 = vsel %vm358_vm4, %v1050_v38, %v360_v28  ;;  %368 = vst [vmem:[#allocation2 + $0x38] sm:$0x3] %v362_v31  ;;  %v314_v34 = vsel %vm311_vm3, %v1036_v26, %v313_v25  ;;  %321 = vst [vmem:[#allocation2 + $0x24] sm:$0xc] %v315_v32  ;;  %v451_v39 = vrot.slane %v448_v35, 4  ;;  %v404_v41 = vrot.slane %v401_v36, 4 }
  0xb0   : > { %367 = vst [vmem:[#allocation2 + $0x30] sm:$0x33] %v361_v33  ;;  %320 = vst [vmem:[#allocation2 + $0x1c] sm:$0xcc] %v314_v34  ;;  %v887_v42 = vcombine.high %v576_v37, %v576_v37  ;;  %v886_v40 = vcombine.low %v576_v37, %v576_v37 }
  0xb1   : > { %v455_v43 = vsel %vm214_vm0, %v450_v56, %v451_v39  ;;  %v457_v38 = vsel %vm453_vm6, %v448_v35, %v451_v39  ;;  %v408_v26 = vsel %vm214_vm0, %v403_v50, %v404_v41  ;;  %v410_v44 = vsel %vm406_vm5, %v401_v36, %v404_v41  ;;  %v948_v50 = vld [vmem:[%s1157_s1] sm:$0xff]  }
  0xb2   : > { %891 = vmatprep.subr.msk.bf16.mxu0 %vm214_vm0, %v887_v42  ;;  %v456_v45 = vsel %vm453_vm6, %v1069_v54, %v455_v43  ;;  %463 = vst [vmem:[#allocation2 + $0x4c] sm:$0x3] %v457_v38  ;;  %v409_v46 = vsel %vm406_vm5, %v1061_v47, %v408_v26  ;;  %416 = vst [vmem:[#allocation2 + $0x38] sm:$0xc] %v410_v44  ;;  %v543_v48 = vpop.permute.xlu1 %542  ;;  %v496_v49 = vpop.permute.xlu0 %495  ;;  %v655_v51 = vsel %vm214_vm0, %v886_v40, 0  ;;  %v979_v54 = vmov 0.0  }
  0xb3   : > { %462 = vst [vmem:[#allocation2 + $0x44] sm:$0x33] %v456_v45  ;;  %415 = vst [vmem:[#allocation2 + $0x30] sm:$0xcc] %v409_v46  ;;  %v546_v52 = vrot.slane %v543_v48, 4  ;;  %v499_v53 = vrot.slane %v496_v49, 4  ;;  %674 = vmatpush1.bf16.msra.mxu0 %v655_v51 }
  0xb4   : > { %902 = vmatprep.subr.bf16.mxu0 %v979_v54 }
  0xb5   : > { %v550_v47 = vsel %vm214_vm0, %v545_v6, %v546_v52  ;;  %v552_v55 = vsel %vm548_vm8, %v543_v48, %v546_v52  ;;  %v503_v56 = vsel %vm214_vm0, %v498_v0, %v499_v53  ;;  %v505_v57 = vsel %vm501_vm7, %v496_v49, %v499_v53 }
  0xb6   : > { %v949_v58 = vld [vmem:[#allocation2 + $0x10] ss:$20 sps:$4 sm:$0xff]   ;;  %v551_v59 = vsel %vm548_vm8, %v1083_v4, %v550_v47  ;;  %558 = vst [vmem:[#allocation2 + $0x60] sm:$0x3] %v552_v55  ;;  %v504_v61 = vsel %vm501_vm7, %v1076_v60, %v503_v56  ;;  %511 = vst [vmem:[#allocation2 + $0x4c] sm:$0xc] %v505_v57  ;;  %892 = vmatmul.mubr.msk.bf16.vlgmr.msra.gmra.mrb[0].mxu0 %vm649_vm9, %v948_v50 }
  0xb7   : > { %v950_v62 = vld [vmem:[#allocation2 + $0xc] ss:$20 sps:$4 sm:$0xff]   ;;  %v952_v63 = vld [vmem:[#allocation2 + $0x8] ss:$20 sps:$4 sm:$0xff]   ;;  %557 = vst [vmem:[#allocation2 + $0x58] sm:$0x33] %v551_v59  ;;  %903 = vmatpush3.bf16.msra.mxu0 %v949_v58  ;;  %908 = vmatprep.mubr.msk.bf16.mxu0 %vm980_vm10, %v979_v54 }
  0xb8   : > { %510 = vst [vmem:[#allocation2 + $0x44] sm:$0xcc] %v504_v61  ;;  %712 = vmatprep.subr.bf16.mxu1 %v950_v62  ;;  %904 = vmatprep.subr.bf16.mxu0 %v979_v54 }
  0xb9   : > { %713 = vmatpush1.bf16.msra.mxu1 %v952_v63 }
  0xbd   : > { %v953_v0 = vld [vmem:[#allocation2 + $0x38] ss:$20 sps:$4 sm:$0xff]   ;;  %v958_v60 = vld [vmem:[#allocation2 + $0x60] ss:$0 sps:$4 sm:$0xff]  }
  0xbe   : > { %905 = vmatpush3.bf16.msra.mxu0 %v953_v0  ;;  %v577_v3 = vld [vmem:[#allocation2 + $0x58] sm:$0xff]  ;;  %v667_v6 = vsel %vm214_vm0, %v958_v60, 0 }
  0xbf   : > { %v954_v1 = vld [vmem:[#allocation2 + $0x34] ss:$20 sps:$4 sm:$0xff]   ;;  %v956_v2 = vld [vmem:[#allocation2 + $0x30] ss:$20 sps:$4 sm:$0xff]   ;;  %v889_v4 = vcombine.high %v577_v3, %v577_v3  ;;  %906 = vmatprep.subr.bf16.mxu0 %v979_v54  ;;  %v888_v5 = vcombine.low %v577_v3, %v577_v3 }
  0xc0   : > { %714 = vmatprep.subr.bf16.mxu1 %v954_v1 }
  0xc1   : > { %715 = vmatpush1.bf16.msra.mxu1 %v956_v2  ;;  %v661_v7 = vsel %vm214_vm0, %v888_v5, 0 }
  0xc2   : > { %893 = vmatprep.subr.msk.bf16.mxu1 %vm214_vm0, %v889_v4  ;;  %907 = vmatpush3.bf16.msra.mxu0 %v667_v6 }
  0xc5   : > { %717 = vmatpush1.bf16.msra.mxu1 %v661_v7  ;;  %909 = vmatmul.mubr.msk.bf16.vlgmr.msra.gmra.mrb[4].mxu0 %vm649_vm9, %v948_v50 }
  0xc8   : > { %894 = vmatmul.mubr.msk.bf16.vlgmr.msra.gmra.mrb[0].mxu1 %vm649_vm9, %v948_v50 }
 0x189   : > { %v703_v8 = vpop.f32.mrb[0].mxu0 }
 0x18a   : > { %796 = vst [vmem:[%s143_s28] sm:$0xff] %v703_v8  ;;  %v705_v9 = vpop.f32.mrb[1].mxu0 }
 0x18b   : > { %797 = vst [vmem:[%s143_s28 + $0x8] sm:$0xff] %v705_v9  ;;  %v707_v10 = vpop.f32.mrb[2].mxu0 }
 0x18c   : > { %801 = vst [vmem:[%s143_s28 + $0x28] sm:$0xff] %v707_v10  ;;  %v709_v11 = vpop.f32.mrb[3].mxu0 }
 0x18d   : > { %802 = vst [vmem:[%s143_s28 + $0x30] sm:$0xff] %v709_v11 }
 0x198   : > { %v789_v12 = vpop.f32.mrb[4].mxu0 }
 0x199   : > { %800 = vst [vmem:[%s143_s28 + $0x20] sm:$0xff] %v789_v12  ;;  %v910_v13 = vpop.f32.mrb[5].mxu0 }
 0x19a   : > { %v792_v15 = vpop.f32.mrb[6].mxu0 }
 0x19b   : > { %v746_v14 = vpop.f32.mrb[0].mxu1  ;;  %805 = vst [vmem:[%s143_s28 + $0x48] sm:$0xff] %v792_v15  ;;  %v911_v17 = vpop.f32.mrb[7].mxu0 }
 0x19c   : > { %798 = vst [vmem:[%s143_s28 + $0x10] sm:$0xff] %v746_v14  ;;  %v748_v16 = vpop.f32.mrb[1].mxu1 }
 0x19d   : > { %799 = vst [vmem:[%s143_s28 + $0x18] sm:$0xff] %v748_v16  ;;  %v750_v18 = vpop.f32.mrb[2].mxu1 }
 0x19e   : > { %803 = vst [vmem:[%s143_s28 + $0x38] sm:$0xff] %v750_v18  ;;  %v752_v19 = vpop.f32.mrb[3].mxu1 }
 0x19f   : > { %804 = vst [vmem:[%s143_s28 + $0x40] sm:$0xff] %v752_v19 }
 0x1a0 PF: > { %s12_s9 = sadd.s32 1, %s966_s9  }
 0x1a1   : > { %p9_p4 = scmp.ge.s32.totalorder %s12_s9, 4  }
 0x1a3   :  { %11 = sbr.rel (!%p9_p4) target bundleno = 1 (0x1), region = 58 }

</bundles_post_ra>
